<compile_context>
chip_gen: v6e
topology: v6e:2x2x1
jax: 0.10.0
libtpu: 0.0.40
codegen_flags: <defaults>
</compile_context>

<pallas_src>
import functools
import math

import jax
import jax.numpy as jnp
from jax.experimental import pallas as pl
from jax.experimental.pallas import tpu as pltpu


# ----------------------------- tiling helpers ------------------------------

_LANE_TILES = (512, 256, 128)                  # last-dim tiles (multiples of 128)
_SUBLANE_TILES = (256, 128, 64, 32, 16, 8)     # second-to-last-dim tiles (multiples of 8)


def _pick(dim, candidates):
    """Largest candidate tile that evenly divides `dim`; fall back to the full dim
    (a block equal to the full array dim bypasses the (8,128) divisibility rule)."""
    for c in candidates:
        if dim >= c and dim % c == 0:
            return c
    return dim


def _cparams(dimsem, block_bytes, scratch_bytes=0):
    """CompilerParams with dimension_semantics and an explicit VMEM budget sized from
    the chosen tiles (double-buffered blocks + scratch, 25% headroom), clamped to a
    ceiling that stays safe on v7x's 64 MiB physical VMEM."""
    est = 2 * block_bytes + scratch_bytes
    limit = int(min(max(est * 1.25, 32 * 1024 * 1024), 56 * 1024 * 1024))
    return pltpu.CompilerParams(dimension_semantics=dimsem, vmem_limit_bytes=limit)


# ------------------------------- RMSNorm ------------------------------------

def _rmsnorm_kernel(x_ref, w_ref, o_ref, *, eps):
    x = x_ref[...].astype(jnp.float32)
    ms = jnp.mean(x * x, axis=-1, keepdims=True)
    inv = jax.lax.rsqrt(ms + eps)
    o_ref[...] = (x * inv * w_ref[...].astype(jnp.float32)).astype(o_ref.dtype)


def rmsnorm(x2d, w, eps=1e-5):
    n, d = x2d.shape
    tm = _pick(n, (1024, 512) + _SUBLANE_TILES)
    sz = jnp.dtype(x2d.dtype).itemsize
    return pl.pallas_call(
        functools.partial(_rmsnorm_kernel, eps=eps),
        out_shape=jax.ShapeDtypeStruct((n, d), x2d.dtype),
        grid=(n // tm,),
        in_specs=[pl.BlockSpec((tm, d), lambda i: (i, 0)),
                  pl.BlockSpec((1, d), lambda i: (0, 0))],
        out_specs=pl.BlockSpec((tm, d), lambda i: (i, 0)),
        compiler_params=_cparams(("parallel",), (2 * tm * d + d) * sz),
    )(x2d, w.reshape(1, d))


# --------------------------- tiled matmul (linear) ---------------------------

def _matmul_kernel(x_ref, w_ref, o_ref, acc_ref):
    @pl.when(pl.program_id(2) == 0)
    def _():
        acc_ref[...] = jnp.zeros_like(acc_ref)
    acc_ref[...] += jnp.dot(x_ref[...], w_ref[...],
                            preferred_element_type=jnp.float32)

    @pl.when(pl.program_id(2) == pl.num_programs(2) - 1)
    def _():
        o_ref[...] = acc_ref[...].astype(o_ref.dtype)


def _matmul_res_kernel(x_ref, w_ref, r_ref, o_ref, acc_ref):
    @pl.when(pl.program_id(2) == 0)
    def _():
        acc_ref[...] = jnp.zeros_like(acc_ref)
    acc_ref[...] += jnp.dot(x_ref[...], w_ref[...],
                            preferred_element_type=jnp.float32)

    @pl.when(pl.program_id(2) == pl.num_programs(2) - 1)
    def _():
        # Residual add fused into the matmul epilogue (saves one HBM pass).
        o_ref[...] = (acc_ref[...] + r_ref[...].astype(jnp.float32)).astype(o_ref.dtype)


def linear(x2d, w, residual=None):
    m, k = x2d.shape
    k2, n = w.shape
    assert k == k2
    tm = _pick(m, _SUBLANE_TILES)
    tn = _pick(n, _LANE_TILES)
    tk = _pick(k, _LANE_TILES)
    sz = jnp.dtype(x2d.dtype).itemsize
    wsz = jnp.dtype(w.dtype).itemsize

    in_specs = [pl.BlockSpec((tm, tk), lambda i, j, kk: (i, kk)),
                pl.BlockSpec((tk, tn), lambda i, j, kk: (kk, j))]
    args = [x2d, w]
    kern = _matmul_kernel
    blk = tm * tk * sz + tk * tn * wsz + tm * tn * sz
    if residual is not None:
        in_specs.append(pl.BlockSpec((tm, tn), lambda i, j, kk: (i, j)))
        args.append(residual)
        kern = _matmul_res_kernel
        blk += tm * tn * sz

    return pl.pallas_call(
        kern,
        out_shape=jax.ShapeDtypeStruct((m, n), x2d.dtype),
        grid=(m // tm, n // tn, k // tk),
        in_specs=in_specs,
        out_specs=pl.BlockSpec((tm, tn), lambda i, j, kk: (i, j)),
        scratch_shapes=[pltpu.VMEM((tm, tn), jnp.float32)],
        compiler_params=_cparams(("parallel", "parallel", "arbitrary"),
                                 blk, tm * tn * 4),
    )(*args)


# ----------------------------- flash attention -------------------------------

_NEG_INF = -1e30


def _flash_kernel(q_ref, k_ref, v_ref, o_ref, m_ref, l_ref, acc_ref, *, scale):
    qi = pl.program_id(2)
    ki = pl.program_id(3)
    tq = q_ref.shape[0]
    tk = k_ref.shape[0]

    @pl.when(ki == 0)
    def _():
        m_ref[...] = jnp.full_like(m_ref, _NEG_INF)
        l_ref[...] = jnp.zeros_like(l_ref)
        acc_ref[...] = jnp.zeros_like(acc_ref)

    # Skip KV blocks entirely above the causal diagonal (no contribution).
    @pl.when(ki * tk <= (qi + 1) * tq - 1)
    def _():
        q = q_ref[...]
        k = k_ref[...]
        # Feed native-dtype operands straight to the MXU; contract last dims so no
        # explicit K transpose goes through the XLU.
        s = jax.lax.dot_general(q, k, (((1,), (1,)), ((), ())),
                                preferred_element_type=jnp.float32) * scale
        row = qi * tq + jax.lax.broadcasted_iota(jnp.int32, (tq, tk), 0)
        col = ki * tk + jax.lax.broadcasted_iota(jnp.int32, (tq, tk), 1)
        s = jnp.where(col <= row, s, _NEG_INF)                    # causal mask

        m_prev = m_ref[...]
        m_new = jnp.maximum(m_prev, jnp.max(s, axis=-1, keepdims=True))
        alpha = jnp.exp(m_prev - m_new)
        p = jnp.exp(s - m_new)
        l_ref[...] = alpha * l_ref[...] + jnp.sum(p, axis=-1, keepdims=True)
        acc_ref[...] = alpha * acc_ref[...] + jnp.dot(
            p.astype(v_ref.dtype), v_ref[...], preferred_element_type=jnp.float32)
        m_ref[...] = m_new

    @pl.when(ki == pl.num_programs(3) - 1)
    def _():
        o_ref[...] = (acc_ref[...] *
                      pl.reciprocal(l_ref[...], approx=True)).astype(o_ref.dtype)


def flash_attention(q, k, v):
    # q: [B, H, S, hd]   k, v: [B, KVH, S, hd]   (GQA: H % KVH == 0)
    b, h, s, hd = q.shape
    kvh = k.shape[1]
    group = h // kvh
    scale = 1.0 / math.sqrt(hd)
    tq = _pick(s, _SUBLANE_TILES)
    tk = _pick(s, (512,) + _SUBLANE_TILES)
    sz = jnp.dtype(q.dtype).itemsize
    blk = (2 * tq * hd + 2 * tk * hd) * sz
    scr = (2 * tq + tq * hd) * 4

    return pl.pallas_call(
        functools.partial(_flash_kernel, scale=scale),
        out_shape=jax.ShapeDtypeStruct((b, h, s, hd), q.dtype),
        grid=(b, h, s // tq, s // tk),
        in_specs=[
            pl.BlockSpec((None, None, tq, hd),
                         lambda bi, hi, qi, ki: (bi, hi, qi, 0)),
            pl.BlockSpec((None, None, tk, hd),
                         lambda bi, hi, qi, ki, g=group: (bi, hi // g, ki, 0)),
            pl.BlockSpec((None, None, tk, hd),
                         lambda bi, hi, qi, ki, g=group: (bi, hi // g, ki, 0)),
        ],
        out_specs=pl.BlockSpec((None, None, tq, hd),
                               lambda bi, hi, qi, ki: (bi, hi, qi, 0)),
        scratch_shapes=[pltpu.VMEM((tq, 1), jnp.float32),     # running max m
                        pltpu.VMEM((tq, 1), jnp.float32),     # running sum l
                        pltpu.VMEM((tq, hd), jnp.float32)],   # output accumulator
        compiler_params=_cparams(
            ("parallel", "parallel", "parallel", "arbitrary"), blk, scr),
    )(q, k, v)


# --------------------------- F-tiled SwiGLU FFN ------------------------------

def _ffn_kernel(x_ref, w1_ref, w3_ref, w2_ref, r_ref, o_ref, acc_ref):
    fi = pl.program_id(1)

    @pl.when(fi == 0)
    def _():
        acc_ref[...] = jnp.zeros_like(acc_ref)

    x = x_ref[...]
    h1 = jnp.dot(x, w1_ref[...], preferred_element_type=jnp.float32)
    h3 = jnp.dot(x, w3_ref[...], preferred_element_type=jnp.float32)
    h = (h1 * jax.nn.sigmoid(h1)) * h3                         # SwiGLU on this F slice
    acc_ref[...] += jnp.dot(h.astype(x.dtype), w2_ref[...],
                            preferred_element_type=jnp.float32)

    @pl.when(fi == pl.num_programs(1) - 1)
    def _():
        # Residual add fused into the FFN epilogue.
        o_ref[...] = (acc_ref[...] + r_ref[...].astype(jnp.float32)).astype(o_ref.dtype)


def swiglu_ffn(x2d, w1, w3, w2, residual):
    n, d = x2d.shape
    f = w1.shape[1]
    tm = _pick(n, _SUBLANE_TILES)
    tf = _pick(f, _LANE_TILES)
    sz = jnp.dtype(x2d.dtype).itemsize
    wsz = jnp.dtype(w1.dtype).itemsize
    blk = 3 * tm * d * sz + 3 * d * tf * wsz   # x, residual, out + w1/w3/w2 slices

    return pl.pallas_call(
        _ffn_kernel,
        out_shape=jax.ShapeDtypeStruct((n, d), x2d.dtype),
        grid=(n // tm, f // tf),
        in_specs=[pl.BlockSpec((tm, d), lambda i, fi: (i, 0)),
                  pl.BlockSpec((d, tf), lambda i, fi: (0, fi)),
                  pl.BlockSpec((d, tf), lambda i, fi: (0, fi)),
                  pl.BlockSpec((tf, d), lambda i, fi: (fi, 0)),
                  pl.BlockSpec((tm, d), lambda i, fi: (i, 0))],
        out_specs=pl.BlockSpec((tm, d), lambda i, fi: (i, 0)),
        scratch_shapes=[pltpu.VMEM((tm, d), jnp.float32)],
        compiler_params=_cparams(("parallel", "arbitrary"), blk, tm * d * 4),
    )(x2d, w1, w3, w2, residual)


# --------------------------------- LM head -----------------------------------

def lm_head(x2d, w):
    # The TTNN LMHead splits the [D, vocab] weight into 4 column blocks (4 ttnn.linear
    # calls + concat along vocab).  That is mathematically a single x @ W over the full
    # weight; the tiled matmul's vocab (N) axis subsumes the split with lane-dense
    # (multiple-of-128) output tiles and pipelines the weight through VMEM.
    return linear(x2d, w)


# ----------------------------- plain-JAX glue ---------------------------------

def _rope_cos_sin(positions, head_dim, theta=500000.0):
    half = head_dim // 2
    freqs = 1.0 / (theta ** (jnp.arange(half, dtype=jnp.float32) / half))
    angles = positions[:, None].astype(jnp.float32) * freqs[None, :]     # [S, hd/2]
    cos = jnp.concatenate([jnp.cos(angles), jnp.cos(angles)], axis=-1)   # [S, hd]
    sin = jnp.concatenate([jnp.sin(angles), jnp.sin(angles)], axis=-1)
    return cos, sin


def _apply_rope(x, cos, sin):
    # x: [B, H, S, hd]; rotate-half formulation.
    # TODO(synk): fuse RoPE into the flash kernel via pltpu.roll(x, hd//2, axis=-1)
    # (XLU slot is idle under the score matmul); kept as JAX glue here.
    x1, x2 = jnp.split(x, 2, axis=-1)
    rot = jnp.concatenate([-x2, x1], axis=-1)
    return x * cos[None, None] + rot * sin[None, None]


# ------------------------------ model forward ---------------------------------

def tt_transformer_forward(x, params, cfg, current_pos=0, mode="decode",
                           get_last_token=-1):
    """Mirrors TtTransformer.forward: layers -> (maybe early return) -> norm -> lm_head."""
    b, s, d = x.shape
    h, kvh, hd = cfg["n_heads"], cfg["n_kv_heads"], cfg["head_dim"]
    positions = current_pos + jnp.arange(s)
    cos, sin = _rope_cos_sin(positions, hd)

    x2 = x.reshape(b * s, d)
    for lp in params["layers"]:
        # --- attention block: norm -> fused QKV -> RoPE -> flash attn -> wo (+res) ---
        hn = rmsnorm(x2, lp["attn_norm"])
        qkv = linear(hn, lp["wqkv"])                       # one fused QKV projection
        q_end = h * hd
        k_end = q_end + kvh * hd
        q = qkv[:, :q_end].reshape(b, s, h, hd).transpose(0, 2, 1, 3)
        k = qkv[:, q_end:k_end].reshape(b, s, kvh, hd).transpose(0, 2, 1, 3)
        v = qkv[:, k_end:].reshape(b, s, kvh, hd).transpose(0, 2, 1, 3)
        q = _apply_rope(q, cos, sin)
        k = _apply_rope(k, cos, sin)
        attn = flash_attention(q, k, v)                    # [B,H,S,hd]
        attn = attn.transpose(0, 2, 1, 3).reshape(b * s, h * hd)
        x2 = linear(attn, lp["wo"], residual=x2)           # residual fused in epilogue
        # --- feed-forward block: norm -> F-tiled SwiGLU (+res fused) ---
        fn = rmsnorm(x2, lp["ffn_norm"])
        x2 = swiglu_ffn(fn, lp["w1"], lp["w3"], lp["w2"], residual=x2)

    # TODO(synk): decode-mode KV cache (paged append + flash-decode over the cached
    # length) is not implemented; attention is recomputed over the full sequence.
    if mode == "prefill" and get_last_token == -1:
        return x2.reshape(b, s, d)
    if get_last_token != -1:
        # TODO(synk): the TTNN slice grabs a 32-row tile; here we slice exactly 1 token.
        x2 = x2.reshape(b, s, d)[:, get_last_token:get_last_token + 1].reshape(b, d)

    xn = rmsnorm(x2, params["final_norm"])
    logits = lm_head(xn, params["lm_head"])
    return logits.reshape(b, -1, cfg["vocab"])


# ------------------------------ parameter init ---------------------------------

def init_params(key, cfg):
    d, h, kvh, hd = cfg["dim"], cfg["n_heads"], cfg["n_kv_heads"], cfg["head_dim"]
    f, vocab, n_layers = cfg["ffn"], cfg["vocab"], cfg["n_layers"]
    assert vocab % cfg["num_splits"] == 0

    def nrm(k, shape, scale=0.05):
        return scale * jax.random.normal(k, shape, jnp.float32)

    keys = iter(jax.random.split(key, 16 * n_layers + 4))
    layers = []
    for _ in range(n_layers):
        wq = nrm(next(keys), (d, h * hd))
        wk = nrm(next(keys), (d, kvh * hd))
        wv = nrm(next(keys), (d, kvh * hd))
        layers.append(dict(
            attn_norm=1.0 + nrm(next(keys), (d,), 0.01),
            # wq/wk/wv fused into a single [D, (H + 2*KVH)*hd] matmul (split after).
            wqkv=jnp.concatenate([wq, wk, wv], axis=1),
            wo=nrm(next(keys), (h * hd, d)),
            ffn_norm=1.0 + nrm(next(keys), (d,), 0.01),
            w1=nrm(next(keys), (d, f)),
            w3=nrm(next(keys), (d, f)),
            w2=nrm(next(keys), (f, d)),
        ))
    final_norm = 1.0 + nrm(next(keys), (d,), 0.01)
    # output.weight is [vocab, d] in the checkpoint; permute(1,0) -> [d, vocab].
    # The TTNN 4-way column split + concat is a sharding artifact; it equals this
    # single [d, vocab] matmul, which lm_head tiles over the vocab axis.
    out_w = nrm(next(keys), (d, vocab))
    return dict(layers=layers, final_norm=final_norm, lm_head=out_w)


# ------------------------------------ main --------------------------------------

if __name__ == "__main__":
    cfg = dict(dim=32, n_heads=4, n_kv_heads=2, head_dim=8,
               ffn=64, vocab=128, n_layers=2, num_splits=4)
    key = jax.random.PRNGKey(0)
    params = init_params(key, cfg)

    B, S = 2, 8
    x = jax.random.normal(jax.random.fold_in(key, 12345), (B, S, cfg["dim"]), jnp.float32)

    out = tt_transformer_forward(x, params, cfg, current_pos=0, mode="decode")
    out = jax.block_until_ready(out)
    assert out.shape == (B, S, cfg["vocab"]), out.shape
    assert bool(jnp.all(jnp.isfinite(out)))
    print("KERNEL_OK")
</pallas_src>

<mosaic_0001>
module attributes {stable_mosaic.version = 11 : i64} {
  func.func @_rmsnorm_kernel(%arg0: i32, %arg1: memref<16x32xf32, #tpu.memory_space<vmem>>, %arg2: memref<1x32xf32, #tpu.memory_space<vmem>>, %arg3: memref<16x32xf32, #tpu.memory_space<vmem>>) attributes {dimension_semantics = [#tpu.dimension_semantics<parallel>], iteration_bounds = array<i64: 1>, scalar_prefetch = 0 : i64, scratch_operands = 0 : i64, tpu.core_type = #tpu.core_type<tc>, window_params = [{transform_indices = @transform_0, window_bounds = array<i64: 16, 32>}, {pipeline_mode = #tpu.pipeline_mode<synchronous>, transform_indices = @transform_1, window_bounds = array<i64: 1, 32>}, {transform_indices = @transform_2, window_bounds = array<i64: 16, 32>}]} {
    %c0 = arith.constant 0 : index
    %c0_0 = arith.constant 0 : index
    %0 = vector.load %arg1[%c0, %c0_0] : memref<16x32xf32, #tpu.memory_space<vmem>>, vector<16x32xf32>
    %1 = arith.mulf %0, %0 : vector<16x32xf32>
    %cst = arith.constant dense<0.000000e+00> : vector<16xf32>
    %2 = vector.multi_reduction <add>, %1, %cst [1] : vector<16x32xf32> to vector<16xf32>
    %3 = vector.shape_cast %2 : vector<16xf32> to vector<16x1xf32>
    %cst_1 = arith.constant 3.200000e+01 : f32
    %4 = vector.broadcast %cst_1 : f32 to vector<16x1xf32>
    %5 = arith.divf %3, %4 : vector<16x1xf32>
    %cst_2 = arith.constant 9.99999974E-6 : f32
    %6 = vector.broadcast %cst_2 : f32 to vector<16x1xf32>
    %7 = arith.addf %5, %6 : vector<16x1xf32>
    %8 = math.rsqrt %7 : vector<16x1xf32>
    %9 = vector.broadcast %8 : vector<16x1xf32> to vector<16x32xf32>
    %10 = arith.mulf %0, %9 : vector<16x32xf32>
    %c0_3 = arith.constant 0 : index
    %c0_4 = arith.constant 0 : index
    %11 = vector.load %arg2[%c0_3, %c0_4] : memref<1x32xf32, #tpu.memory_space<vmem>>, vector<1x32xf32>
    %12 = vector.broadcast %11 : vector<1x32xf32> to vector<16x32xf32>
    %13 = arith.mulf %10, %12 : vector<16x32xf32>
    %c0_5 = arith.constant 0 : index
    %c0_6 = arith.constant 0 : index
    %14 = vector.load %arg3[%c0_5, %c0_6] : memref<16x32xf32, #tpu.memory_space<vmem>>, vector<16x32xf32>
    tpu.vector_store %arg3[%c0_5, %c0_6], %13 {strides = array<i32>} : memref<16x32xf32, #tpu.memory_space<vmem>>, vector<16x32xf32>,
    return
  }
  func.func @transform_0(%arg0: i32) -> (i32, i32) {
    %c0_i32 = arith.constant 0 : i32
    %c0_i32_0 = arith.constant 0 : i32
    return %arg0, %c0_i32 : i32, i32
  }
  func.func @transform_1(%arg0: i32) -> (i32, i32) {
    %c0_i32 = arith.constant 0 : i32
    %c0_i32_0 = arith.constant 0 : i32
    %c0_i32_1 = arith.constant 0 : i32
    return %c0_i32, %c0_i32_0 : i32, i32
  }
  func.func @transform_2(%arg0: i32) -> (i32, i32) {
    %c0_i32 = arith.constant 0 : i32
    %c0_i32_0 = arith.constant 0 : i32
    return %arg0, %c0_i32 : i32, i32
  }
}

</mosaic_0001>

<bundles_post_ra>
// kernel: tpu_custom_call.1
= control target key start
LH: loop header
LB: loop body
LE: loop exit
PB: predicated region body
PF: predicated region fallthrough
CT: control target
= control target key end

     0   :  { %7 = vsyncpa [#allocation3], 0  ;;  %s165_s0 = inlined_call_operand.hbm [shape: f32[16,32], index: 0, kind: input, shape index: {}]   ;;  %s166_s1 = inlined_call_operand.vmem [shape: f32[1,32], index: 1, kind: input, shape index: {}]   ;;  %s167_s2 = inlined_call_operand.hbm [shape: f32[16,32], index: 2, kind: output, shape index: {}]  }
   0x1   :  { %8 = vsyncpa [#allocation4], 0  ;;  %s127_s9 = smov [#allocation2]  }
   0x2   :  { %s14_s10 = sshll.u32 %s127_s9, 4  ;;  %s15_s10 = int_to_ptr.vmem [resolvable:$true] %s14_s10 }
   0x3   :  { %s91_s11 = scalar_lea.vmem %s15_s10, 256  ;;  %p96_p1 = scmp.lt.s32.totalorder %s15_s10, %s15_s10 }
   0x4   :  { %p92_p0 = scmp.ne.s32.totalorder %s15_s10, %s91_s11  ;;  %p97_p2 = scmp.lt.s32.totalorder %s91_s11, %s91_s11 }
   0x6   :  { %p98_p3 = por %p97_p2, %p96_p1 }
   0x8   :  { %p99_p4 = pnand %p98_p3, %p92_p0 }
   0xa   :  { %102 = shalt.err (!%p99_p4)
}
   0xb   :  { %s128_s12 = smov 128   ;;  %s129_s13 = smov 8  }
   0xc   :  { %20 = dma.hbm_to_vmem [thread:$0]  %s165_s0, 256, %s15_s10, [#allocation3], %s128_s12, %s128_s12, %s129_s13  }
   0xd   :  { %123 = dma.done.wait [#allocation3], 256  }
   0xe   :  { %124 = vsyncadd [#allocation3], 4294967040  ;;  %v26_v0 = vld [vmem:[#allocation2] sm:$0xff]  ;;  %vm30_vm0 = vcmask 261120   ;;  %v27_v1 = vld [vmem:[#allocation2 + $0x8] sm:$0xff]  ;;  %s130_s17 = smov [#allocation5]  }
   0xf   :  { %v28_v2 = vmul.f32 %v26_v0, %v26_v0  ;;  %v29_v3 = vmul.f32 %v27_v1, %v27_v1  ;;  %v74_v13 = vld [vmem:[%s166_s1] ss:$0 sm:$0xff]  ;;  %s62_s18 = sshll.u32 %s130_s17, 4  ;;  %s63_s18 = int_to_ptr.vmem [resolvable:$true] %s62_s18 }
  0x10   :  { %s103_s19 = scalar_lea.vmem %s63_s18, 256  ;;  %p108_p6 = scmp.lt.s32.totalorder %s63_s18, %s63_s18 }
  0x11   :  { %v31_v4 = vsel %vm30_vm0, %v28_v2, 0.0  ;;  %v34_v5 = vsel %vm30_vm0, %v29_v3, 0.0  ;;  %p104_p5 = scmp.ne.s32.totalorder %s63_s18, %s103_s19  ;;  %p109_p7 = scmp.lt.s32.totalorder %s103_s19, %s103_s19 }
  0x12   :  { %32 = vadd.xlane.f32.xlu0 %v31_v4 }
  0x13   :  { %p110_p8 = por %p109_p7, %p108_p6 }
  0x15   :  { %p111_p9 = pnand %p110_p8, %p104_p5 }
  0x16   :  { %35 = vadd.xlane.f32.xlu0 %v34_v5 }
  0x9b   :  { %v33_v6 = vpop.xlane.xlu0 %32 }
  0x9c   :  { %v38_v7 = vmul.f32 0.03125, %v33_v6 }
  0x9e   :  { %v40_v8 = vadd.f32 1e-05, %v38_v7 }
  0x9f   :  { %v36_v9 = vpop.xlane.xlu0 %35 }
  0xa0   :  { %79 = vrsqrt.f32 %v40_v8  ;;  %v39_v10 = vmul.f32 0.03125, %v36_v9 }
  0xa2   :  { %v41_v11 = vadd.f32 1e-05, %v39_v10 }
  0xa4   :  { %81 = vrsqrt.f32 %v41_v11 }
  0xad   :  { %v80_v12 = vpop.eup %79 }
  0xae   :  { %v44_v14 = vmul.f32 %v80_v12, %v26_v0 }
  0xb0   :  { %v53_v15 = vmul.f32 %v74_v13, %v44_v14 }
  0xb1   :  { %v82_v16 = vpop.eup %81 }
  0xb2   :  { %v45_v17 = vmul.f32 %v82_v16, %v27_v1  ;;  %55 = vst.msk [vmem:[#allocation5] sm:$0xff] %vm30_vm0, %v53_v15 }
  0xb4   :  { %v54_v18 = vmul.f32 %v74_v13, %v45_v17 }
  0xb6   :  { %56 = vst.msk [vmem:[#allocation5 + $0x8] sm:$0xff] %vm30_vm0, %v54_v18 }
  0xb7   :  { %114 = shalt.err (!%p111_p9)
}
  0xb8   :  { %68 = dma.vmem_to_hbm [thread:$0]  %s63_s18, 256, %s167_s2, [#allocation4], %s128_s12, %s128_s12, %s129_s13  }
  0xb9   :  { %125 = dma.done.wait [#allocation4], 256  }
  0xba   :  { %126 = vsyncadd [#allocation4], 4294967040 }
  0xbb   :  { %72 = vsyncpa [#allocation3], 1 }
  0xbc   :  { %73 = vsyncpa [#allocation4], 1 }

</bundles_post_ra>
